<compile_context>
chip_gen: v7x
topology: tpu7x:2x2x1
jax: 0.10.0
libtpu: 0.0.40
codegen_flags: <defaults>
</compile_context>

<pallas_src>
import functools
import math

import jax
import jax.numpy as jnp
from jax.experimental import pallas as pl
from jax.experimental.pallas import tpu as pltpu


# ----------------------------------------------------------------------------
# Glue: bilinear "rotation" matrix implied by
#       F.affine_grid(theta) + F.grid_sample(..., align_corners=False).
# ----------------------------------------------------------------------------
def build_rotation_matrix(H, W, angle):
    xs = (2.0 * jnp.arange(W, dtype=jnp.float32) + 1.0) / W - 1.0  # (W,)
    ys = (2.0 * jnp.arange(H, dtype=jnp.float32) + 1.0) / H - 1.0  # (H,)
    ca = jnp.float32(math.cos(angle))
    sa = jnp.float32(math.sin(angle))
    # theta = [[cos, -sin, 0], [sin, cos, 0]]
    gx = ca * xs[None, :] - sa * ys[:, None]   # (H, W) sampled x in [-1, 1]
    gy = sa * xs[None, :] + ca * ys[:, None]   # (H, W) sampled y in [-1, 1]

    # grid_sample unnormalization (align_corners=False)
    ix = ((gx + 1.0) * W - 1.0) / 2.0
    iy = ((gy + 1.0) * H - 1.0) / 2.0

    x0 = jnp.floor(ix)
    y0 = jnp.floor(iy)
    x1 = x0 + 1.0
    y1 = y0 + 1.0
    wx1 = ix - x0
    wx0 = 1.0 - wx1
    wy1 = iy - y0
    wy0 = 1.0 - wy1

    HW = H * W
    out_idx = jnp.arange(HW)
    M = jnp.zeros((HW, HW), jnp.float32)

    def add_corner(M, xc, yc, w):
        inb = (xc >= 0) & (xc <= W - 1) & (yc >= 0) & (yc <= H - 1)
        w = jnp.where(inb, w, 0.0).reshape(HW)
        src = (jnp.clip(yc, 0, H - 1).astype(jnp.int32) * W
               + jnp.clip(xc, 0, W - 1).astype(jnp.int32)).reshape(HW)
        return M.at[out_idx, src].add(w)

    M = add_corner(M, x0, y0, wx0 * wy0)
    M = add_corner(M, x1, y0, wx1 * wy0)
    M = add_corner(M, x0, y1, wx0 * wy1)
    M = add_corner(M, x1, y1, wx1 * wy1)
    return M  # rotated_flat[p] = sum_q M[p, q] * input_flat[q]


@functools.lru_cache(maxsize=16)
def _rotation_matrix_T_bf16(H, W, angle):
    # Transposed + bf16: half the VMEM/HBM bytes, full-rate MXU operand.
    return build_rotation_matrix(H, W, angle).T.astype(jnp.bfloat16)


def _round_up(x, m):
    return ((x + m - 1) // m) * m


def _lcm(a, b):
    return a * b // math.gcd(a, b)


_VMEM_CEILING = None


def _vmem_ceiling():
    """~0.75 * physical VMEM (48 MiB on v7x, 96 MiB on v5e/v6e)."""
    global _VMEM_CEILING
    if _VMEM_CEILING is None:
        cap = 64 << 20  # conservative fallback (v7x per-TC physical VMEM)
        try:
            cap = int(pltpu.get_tpu_info().vmem_capacity_bytes)
        except Exception:
            pass
        _VMEM_CEILING = (cap * 3) // 4
    return _VMEM_CEILING


# ----------------------------------------------------------------------------
# Pallas kernel: one grid step per TM-row block of the (B*C, HW) heatmaps.
# ----------------------------------------------------------------------------
def loss_kernel(g_ref, h1_ref, h2_ref, mT_ref, out_ref, *, inv_n):
    h1 = h1_ref[...].astype(jnp.float32)             # (TM, HW)
    h2 = h2_ref[...].astype(jnp.float32)             # (TM, HW)

    # rotate_heatmap(heatmaps2) as an MXU matmul: bf16 operands, f32 accumulate.
    rot2 = jnp.dot(h2_ref[...].astype(jnp.bfloat16), mT_ref[...],
                   preferred_element_type=jnp.float32)   # (TM, HW) f32

    d12 = h1 - h2          # MSE(heatmaps1, heatmaps2) path, f32
    dr = h1 - rot2         # stand-in GraphScore path, f32

    # Lane (XLU) reductions first: (TM, HW) -> (TM, 1).  Keeps the MXU free
    # for the rotation matmul (was two full-width f32 grouping matmuls in v2).
    row12 = jnp.sum(d12 * d12, axis=-1, keepdims=True)   # (TM, 1)
    rowr = jnp.sum(dr * dr, axis=-1, keepdims=True)      # (TM, 1)

    # Tiny per-sample aggregation with the hoisted grouping matrix G (S, TM).
    ps12 = jnp.dot(g_ref[...], row12, preferred_element_type=jnp.float32)  # (S, 1)
    psr = jnp.dot(g_ref[...], rowr, preferred_element_type=jnp.float32)    # (S, 1)

    # Per-sample l2 * exp(-GraphScore); exp on the EUP.
    vals = (ps12 * inv_n) * jnp.exp(-(psr * inv_n))       # (S, 1)

    # Lane-dense (8, 128) output block: zero it, store the block partial once.
    out_ref[...] = jnp.zeros_like(out_ref)
    out_ref[0:1, 0:1] = jnp.sum(vals, keepdims=True)


# ----------------------------------------------------------------------------
# jitted wrapper
# ----------------------------------------------------------------------------
@jax.jit
def _loss_impl(heatmaps1, heatmaps2, m_t):
    B, C, H, W = heatmaps1.shape
    HW = H * W
    R = B * C

    # Row-block size: multiple of 8 (sublanes) and of C (samples never split).
    group = _lcm(8, C)
    target_rows = 256   # NOTE: 128 would suffice to fill the v5e 128-wide MXU.
    TM = min(_round_up(target_rows, group), _round_up(R, group))
    # If everything fits one block but R allows it, split so the "parallel"
    # grid axis can shard across both v7x TensorCores.
    if R > group and -(-R // TM) == 1:
        TM = _round_up(-(-R // 2), group)
    num_blocks = -(-R // TM)
    R_pad = num_blocks * TM
    S = TM // C                                        # samples per block

    # Keep the producer dtype (bf16 inputs halve the HBM stream); the kernel
    # upcasts the diff path to f32 internally.
    h1 = heatmaps1.reshape(R, HW)
    h2 = heatmaps2.reshape(R, HW)
    if R_pad != R:                                     # zero rows add exactly 0
        h1 = jnp.pad(h1, ((0, R_pad - R), (0, 0)))
        h2 = jnp.pad(h2, ((0, R_pad - R), (0, 0)))

    # Hoisted (loop-invariant) grouping matrix: G[s, r] = 1 iff row r of a
    # block belongs to block-sample s.  Built once here, not per grid step.
    rows = jnp.arange(TM, dtype=jnp.int32)
    smp = jnp.arange(S, dtype=jnp.int32)
    G = (rows[None, :] // C == smp[:, None]).astype(jnp.float32)   # (S, TM)

    kern = functools.partial(loss_kernel, inv_n=1.0 / (C * HW))

    g_spec = pl.BlockSpec((S, TM), lambda i: (0, 0))
    hm_spec = pl.BlockSpec((TM, HW), lambda i: (i, 0))
    # Constant index_map: the pipeline fetches M once and re-uses it.
    m_spec = pl.BlockSpec((HW, HW), lambda i: (0, 0))
    out_spec = pl.BlockSpec((8, 128), lambda i: (i, 0))

    m_bytes = HW * HW * m_t.dtype.itemsize
    hm_bytes = 2 * 2 * TM * HW * h1.dtype.itemsize      # 2 inputs, double-buffered
    want = 2 * m_bytes + hm_bytes + (1 << 20)
    vmem_limit = int(min(_vmem_ceiling(), max(want, 16 << 20)))

    cost = pl.CostEstimate(
        flops=2 * R_pad * HW * HW + 8 * R_pad * HW
              + 4 * num_blocks * S * TM,
        transcendentals=num_blocks * S,
        bytes_accessed=2 * R_pad * HW * h1.dtype.itemsize + m_bytes
                       + num_blocks * 8 * 128 * 4)

    out = pl.pallas_call(
        kern,
        out_shape=jax.ShapeDtypeStruct((num_blocks * 8, 128), jnp.float32),
        grid_spec=pltpu.PrefetchScalarGridSpec(
            num_scalar_prefetch=0,
            grid=(num_blocks,),
            in_specs=[g_spec, hm_spec, hm_spec, m_spec],
            out_specs=out_spec),
        compiler_params=pltpu.CompilerParams(
            dimension_semantics=("parallel",),
            vmem_limit_bytes=vmem_limit),
        cost_estimate=cost,
    )(G, h1, h2, m_t)

    # Each block wrote its partial at [0, 0] of its (8, 128) block; sum them.
    return jnp.sum(out) / B


def self_contrastive_loss(heatmaps1, heatmaps2, angle):
    _, _, H, W = heatmaps1.shape
    m_t = _rotation_matrix_T_bf16(int(H), int(W), float(angle))
    return _loss_impl(heatmaps1, heatmaps2, m_t)


# ----------------------------------------------------------------------------
# Pure-JAX f32 reference (same math) for a sanity check.
# ----------------------------------------------------------------------------
def reference_loss(heatmaps1, heatmaps2, angle):
    B, C, H, W = heatmaps1.shape
    HW = H * W
    M = build_rotation_matrix(H, W, angle)
    h1 = heatmaps1.reshape(B, C, HW).astype(jnp.float32)
    h2 = heatmaps2.reshape(B, C, HW).astype(jnp.float32)
    n = C * HW
    loss = 0.0
    for i in range(B):
        rot2 = h2[i] @ M.T
        l2 = jnp.sum((h1[i] - h2[i]) ** 2) / n
        gscore = jnp.sum((h1[i] - rot2) ** 2) / n
        loss = loss + l2 * jnp.exp(-gscore)
    return loss / B


if __name__ == "__main__":
    B, C, H, W = 2, 4, 16, 16          # num_points = C = 4
    angle = math.pi / 6.0

    key = jax.random.PRNGKey(0)
    k1, k2 = jax.random.split(key)
    heatmaps1 = jax.random.uniform(k1, (B, C, H, W), jnp.float32)
    heatmaps2 = jax.random.uniform(k2, (B, C, H, W), jnp.float32)

    loss = self_contrastive_loss(heatmaps1, heatmaps2, angle)
    loss = jax.block_until_ready(loss)

    ref = reference_loss(heatmaps1, heatmaps2, angle)
    assert jnp.isfinite(loss)
    assert jnp.allclose(loss, ref, rtol=2e-3, atol=1e-5), (loss, ref)

    print("KERNEL_OK")
</pallas_src>

<mosaic_0001>
module attributes {stable_mosaic.version = 11 : i64} {
  func.func @loss_kernel(%arg0: i32, %arg1: memref<2x8xf32, #tpu.memory_space<vmem>>, %arg2: memref<8x256xf32, #tpu.memory_space<vmem>>, %arg3: memref<8x256xf32, #tpu.memory_space<vmem>>, %arg4: memref<256x256xbf16, #tpu.memory_space<vmem>>, %arg5: memref<8x128xf32, #tpu.memory_space<vmem>>) attributes {dimension_semantics = [#tpu.dimension_semantics<parallel>], iteration_bounds = array<i64: 1>, scalar_prefetch = 0 : i64, scratch_operands = 0 : i64, tpu.core_type = #tpu.core_type<tc>, window_params = [{pipeline_mode = #tpu.pipeline_mode<synchronous>, transform_indices = @transform_0, window_bounds = array<i64: 2, 8>}, {transform_indices = @transform_1, window_bounds = array<i64: 8, 256>}, {transform_indices = @transform_2, window_bounds = array<i64: 8, 256>}, {pipeline_mode = #tpu.pipeline_mode<synchronous>, transform_indices = @transform_3, window_bounds = array<i64: 256, 256>}, {transform_indices = @transform_4, window_bounds = array<i64: 8, 128>}]} {
    %c0 = arith.constant 0 : index
    %c0_0 = arith.constant 0 : index
    %0 = vector.load %arg2[%c0, %c0_0] : memref<8x256xf32, #tpu.memory_space<vmem>>, vector<8x256xf32>
    %c0_1 = arith.constant 0 : index
    %c0_2 = arith.constant 0 : index
    %1 = vector.load %arg3[%c0_1, %c0_2] : memref<8x256xf32, #tpu.memory_space<vmem>>, vector<8x256xf32>
    %c0_3 = arith.constant 0 : index
    %c0_4 = arith.constant 0 : index
    %2 = vector.load %arg3[%c0_3, %c0_4] : memref<8x256xf32, #tpu.memory_space<vmem>>, vector<8x256xf32>
    %3 = arith.truncf %2 : vector<8x256xf32> to vector<8x256xbf16>
    %c0_5 = arith.constant 0 : index
    %c0_6 = arith.constant 0 : index
    %4 = vector.load %arg4[%c0_5, %c0_6] : memref<256x256xbf16, #tpu.memory_space<vmem>>, vector<256x256xbf16>
    %cst = arith.constant dense<0.000000e+00> : vector<8x256xf32>
    %5 = tpu.matmul %3, %4, %cst {dimension_numbers = #tpu.dot_dimension_numbers<[1], [0], [0], [1], [0, 0, 1, 1], [], []>} : vector<8x256xbf16>, vector<256x256xbf16>, vector<8x256xf32> -> vector<8x256xf32>
    %6 = arith.subf %0, %1 : vector<8x256xf32>
    %7 = arith.subf %0, %5 : vector<8x256xf32>
    %8 = arith.mulf %6, %6 : vector<8x256xf32>
    %cst_7 = arith.constant dense<0.000000e+00> : vector<8xf32>
    %9 = vector.multi_reduction <add>, %8, %cst_7 [1] : vector<8x256xf32> to vector<8xf32>
    %10 = vector.shape_cast %9 : vector<8xf32> to vector<8x1xf32>
    %11 = arith.mulf %7, %7 : vector<8x256xf32>
    %cst_8 = arith.constant dense<0.000000e+00> : vector<8xf32>
    %12 = vector.multi_reduction <add>, %11, %cst_8 [1] : vector<8x256xf32> to vector<8xf32>
    %13 = vector.shape_cast %12 : vector<8xf32> to vector<8x1xf32>
    %c0_9 = arith.constant 0 : index
    %c0_10 = arith.constant 0 : index
    %14 = vector.load %arg1[%c0_9, %c0_10] : memref<2x8xf32, #tpu.memory_space<vmem>>, vector<2x8xf32>
    %cst_11 = arith.constant dense<0.000000e+00> : vector<2x1xf32>
    %15 = tpu.matmul %14, %10, %cst_11 {dimension_numbers = #tpu.dot_dimension_numbers<[1], [0], [0], [1], [0, 0, 1, 1], [], []>} : vector<2x8xf32>, vector<8x1xf32>, vector<2x1xf32> -> vector<2x1xf32>
    %c0_12 = arith.constant 0 : index
    %c0_13 = arith.constant 0 : index
    %16 = vector.load %arg1[%c0_12, %c0_13] : memref<2x8xf32, #tpu.memory_space<vmem>>, vector<2x8xf32>
    %cst_14 = arith.constant dense<0.000000e+00> : vector<2x1xf32>
    %17 = tpu.matmul %16, %13, %cst_14 {dimension_numbers = #tpu.dot_dimension_numbers<[1], [0], [0], [1], [0, 0, 1, 1], [], []>} : vector<2x8xf32>, vector<8x1xf32>, vector<2x1xf32> -> vector<2x1xf32>
    %cst_15 = arith.constant 9.765625E-4 : f32
    %18 = vector.broadcast %cst_15 : f32 to vector<2x1xf32>
    %19 = arith.mulf %15, %18 : vector<2x1xf32>
    %cst_16 = arith.constant 9.765625E-4 : f32
    %20 = vector.broadcast %cst_16 : f32 to vector<2x1xf32>
    %21 = arith.mulf %17, %20 : vector<2x1xf32>
    %cst_17 = arith.constant 0.000000e+00 : f32
    %22 = vector.broadcast %cst_17 : f32 to vector<2x1xf32>
    %23 = arith.subf %22, %21 : vector<2x1xf32>
    %24 = math.exp %23 : vector<2x1xf32>
    %25 = arith.mulf %19, %24 : vector<2x1xf32>
    %cst_18 = arith.constant 0.000000e+00 : f32
    %26 = vector.broadcast %cst_18 : f32 to vector<8x128xf32>
    %c0_19 = arith.constant 0 : index
    %c0_20 = arith.constant 0 : index
    %27 = vector.load %arg5[%c0_19, %c0_20] : memref<8x128xf32, #tpu.memory_space<vmem>>, vector<8x128xf32>
    tpu.vector_store %arg5[%c0_19, %c0_20], %26 {strides = array<i32>} : memref<8x128xf32, #tpu.memory_space<vmem>>, vector<8x128xf32>,
    %28 = vector.shape_cast %25 : vector<2x1xf32> to vector<1x2x1xf32>
    %cst_21 = arith.constant dense<0.000000e+00> : vector<1xf32>
    %29 = vector.multi_reduction <add>, %28, %cst_21 [1, 2] : vector<1x2x1xf32> to vector<1xf32>
    %30 = vector.shape_cast %29 : vector<1xf32> to vector<1x1x1xf32>
    %31 = vector.extract %30[0, 0, 0] : f32 from vector<1x1x1xf32>
    %32 = vector.broadcast %31 : f32 to vector<1x1xf32>
    %c0_22 = arith.constant 0 : index
    %c0_23 = arith.constant 0 : index
    %33 = vector.load %arg5[%c0_22, %c0_23] : memref<8x128xf32, #tpu.memory_space<vmem>>, vector<1x1xf32>
    tpu.vector_store %arg5[%c0_22, %c0_23], %32 {strides = array<i32>} : memref<8x128xf32, #tpu.memory_space<vmem>>, vector<1x1xf32>,
    return
  }
  func.func @transform_0(%arg0: i32) -> (i32, i32) {
    %c0_i32 = arith.constant 0 : i32
    %c0_i32_0 = arith.constant 0 : i32
    %c0_i32_1 = arith.constant 0 : i32
    return %c0_i32, %c0_i32_0 : i32, i32
  }
  func.func @transform_1(%arg0: i32) -> (i32, i32) {
    %c0_i32 = arith.constant 0 : i32
    %c0_i32_0 = arith.constant 0 : i32
    return %arg0, %c0_i32 : i32, i32
  }
  func.func @transform_2(%arg0: i32) -> (i32, i32) {
    %c0_i32 = arith.constant 0 : i32
    %c0_i32_0 = arith.constant 0 : i32
    return %arg0, %c0_i32 : i32, i32
  }
  func.func @transform_3(%arg0: i32) -> (i32, i32) {
    %c0_i32 = arith.constant 0 : i32
    %c0_i32_0 = arith.constant 0 : i32
    %c0_i32_1 = arith.constant 0 : i32
    return %c0_i32, %c0_i32_0 : i32, i32
  }
  func.func @transform_4(%arg0: i32) -> (i32, i32) {
    %c0_i32 = arith.constant 0 : i32
    %c0_i32_0 = arith.constant 0 : i32
    return %arg0, %c0_i32 : i32, i32
  }
}

</mosaic_0001>

<bundles_post_ra>
// kernel: _loss_impl.1
= control target key start
LH: loop header
LB: loop body
LE: loop exit
PB: predicated region body
PF: predicated region fallthrough
CT: control target
= control target key end

     0   :  { %v542_v43 = vmov 0.0   ;;  %vm543_vm0 = vmmov 0   ;;  %vm271_vm1 = vcmask 64512   ;;  %vm422_vm2 = vcmask 1024   ;;  %s688_s3 = inlined_call_operand.vmem [shape: bf16[256,256], index: 3, kind: input, shape index: {}]   ;;  %s689_s2 = inlined_call_operand.vmem [shape: f32[8,256], index: 2, kind: input, shape index: {}]   ;;  %s690_s1 = inlined_call_operand.vmem [shape: f32[8,256], index: 1, kind: input, shape index: {}]   ;;  %s691_s0 = inlined_call_operand.vmem [shape: f32[2,8], index: 0, kind: input, shape index: {}]   ;;  %s692_s4 = inlined_call_operand.vmem [shape: f32[8,128], index: 4, kind: output, shape index: {}]  }
   0x1   :  { %v492_v0 = vld [vmem:[%s688_s3 + $0x4] ss:$8 sps:$4 sm:$0xff]   ;;  %v494_v1 = vld [vmem:[%s688_s3] ss:$8 sps:$4 sm:$0xff]   ;;  %v495_v2 = vld [vmem:[%s688_s3 + $0x14] ss:$8 sps:$4 sm:$0xff]   ;;  %478 = vmatprep.subr.mxu1 %v542_v43  ;;  %480 = vmatprep.mubr.msk.f32.mxu1 %vm543_vm0, %v542_v43  ;;  %421 = vst [vmem:[%s692_s4] sm:$0xff] %v542_v43 }
   0x2   :  { %215 = vmatprep.subr.bf16.mxu0 %v492_v0  ;;  %v497_v3 = vld [vmem:[%s688_s3 + $0x10] ss:$8 sps:$4 sm:$0xff]   ;;  %v498_v4 = vld [vmem:[%s688_s3 + $0x24] ss:$8 sps:$4 sm:$0xff]   ;;  %v500_v5 = vld [vmem:[%s688_s3 + $0x20] ss:$8 sps:$4 sm:$0xff]  }
   0x3   :  { %216 = vmatpush1.bf16.msra.mxu0 %v494_v1  ;;  %v501_v6 = vld [vmem:[%s688_s3 + $0x34] ss:$8 sps:$4 sm:$0xff]   ;;  %v503_v7 = vld [vmem:[%s688_s3 + $0x30] ss:$8 sps:$4 sm:$0xff]   ;;  %v504_v8 = vld [vmem:[%s688_s3 + $0x44] ss:$8 sps:$4 sm:$0xff]  }
   0x4   :  { %217 = vmatprep.subr.bf16.mxu0 %v495_v2  ;;  %v506_v9 = vld [vmem:[%s688_s3 + $0x40] ss:$8 sps:$4 sm:$0xff]   ;;  %v507_v10 = vld [vmem:[%s688_s3 + $0x54] ss:$8 sps:$4 sm:$0xff]   ;;  %v509_v11 = vld [vmem:[%s688_s3 + $0x50] ss:$8 sps:$4 sm:$0xff]  }
   0x5   :  { %v510_v12 = vld [vmem:[%s688_s3 + $0x64] ss:$8 sps:$4 sm:$0xff]   ;;  %v512_v15 = vld [vmem:[%s688_s3 + $0x60] ss:$8 sps:$4 sm:$0xff]   ;;  %v513_v16 = vld [vmem:[%s688_s3 + $0x74] ss:$8 sps:$4 sm:$0xff]  }
   0x6   :  { %v20_v13 = vld [vmem:[%s689_s2 + $0x8] sm:$0xff]  ;;  %v515_v17 = vld [vmem:[%s688_s3 + $0x70] ss:$8 sps:$4 sm:$0xff]   ;;  %v519_v20 = vld [vmem:[%s688_s3 + $0x94] ss:$8 sps:$4 sm:$0xff]   ;;  %vm434_vm3 = vcmask 0  }
   0x7   :  { %218 = vmatpush1.bf16.msra.mxu0 %v497_v3  ;;  %v22_v14 = vpack.c.bf16 %v20_v13, %v20_v13  ;;  %v516_v18 = vld [vmem:[%s688_s3 + $0x84] ss:$8 sps:$4 sm:$0xff]   ;;  %v518_v19 = vld [vmem:[%s688_s3 + $0x80] ss:$8 sps:$4 sm:$0xff]   ;;  %v521_v21 = vld [vmem:[%s688_s3 + $0x90] ss:$8 sps:$4 sm:$0xff]  }
   0x8   :  { %219 = vmatprep.subr.bf16.mxu0 %v498_v4  ;;  %v522_v22 = vld [vmem:[%s688_s3 + $0xa4] ss:$8 sps:$4 sm:$0xff]   ;;  %v524_v23 = vld [vmem:[%s688_s3 + $0xa0] ss:$8 sps:$4 sm:$0xff]   ;;  %v525_v24 = vld [vmem:[%s688_s3 + $0xb4] ss:$8 sps:$4 sm:$0xff]  }
   0x9   :  { %247 = vmatprep.mubr.bf16.mxu0 %v22_v14  ;;  %v527_v25 = vld [vmem:[%s688_s3 + $0xb0] ss:$8 sps:$4 sm:$0xff]   ;;  %v528_v26 = vld [vmem:[%s688_s3 + $0xc4] ss:$8 sps:$4 sm:$0xff]   ;;  %v530_v27 = vld [vmem:[%s688_s3 + $0xc0] ss:$8 sps:$4 sm:$0xff]  }
   0xa   :  { %v531_v28 = vld [vmem:[%s688_s3 + $0xd4] ss:$8 sps:$4 sm:$0xff]   ;;  %v533_v29 = vld [vmem:[%s688_s3 + $0xd0] ss:$8 sps:$4 sm:$0xff]   ;;  %v534_v30 = vld [vmem:[%s688_s3 + $0xe4] ss:$8 sps:$4 sm:$0xff]  }
   0xb   :  { %220 = vmatpush1.bf16.msra.mxu0 %v500_v5  ;;  %v536_v31 = vld [vmem:[%s688_s3 + $0xe0] ss:$8 sps:$4 sm:$0xff]   ;;  %v537_v32 = vld [vmem:[%s688_s3 + $0xf4] ss:$8 sps:$4 sm:$0xff]   ;;  %v539_v33 = vld [vmem:[%s688_s3 + $0xf0] ss:$8 sps:$4 sm:$0xff]  }
   0xc   :  { %221 = vmatprep.subr.bf16.mxu0 %v501_v6  ;;  %v19_v34 = vld [vmem:[%s689_s2] sm:$0xff]  ;;  %v18_v37 = vld [vmem:[%s690_s1 + $0x8] sm:$0xff] }
   0xd   :  { %v21_v35 = vpack.c.bf16 %v19_v34, %v19_v34  ;;  %v17_v36 = vld [vmem:[%s690_s1] sm:$0xff]  ;;  %v257_v39 = vsub.f32 %v18_v37, %v20_v13 }
   0xe   :  { %v256_v38 = vsub.f32 %v17_v36, %v19_v34  ;;  %v270_v53 = vld [vmem:[%s691_s0] sm:$0x3] }
   0xf   :  { %222 = vmatpush1.bf16.msra.mxu0 %v503_v7  ;;  %v261_v41 = vmul.f32 %v257_v39, %v257_v39 }
  0x10   :  { %223 = vmatprep.subr.bf16.mxu0 %v504_v8  ;;  %v260_v40 = vmul.f32 %v256_v38, %v256_v38 }
  0x12   :  { %v262_v42 = vadd.f32 %v261_v41, %v260_v40 }
  0x13   :  { %224 = vmatpush1.bf16.msra.mxu0 %v506_v9 }
  0x14   :  { %225 = vmatprep.subr.bf16.mxu0 %v507_v10  ;;  %263 = vadd.xlane.f32.xlu0 %v262_v42 }
  0x17   :  { %226 = vmatpush1.bf16.msra.mxu0 %v509_v11 }
  0x18   :  { %227 = vmatprep.subr.bf16.mxu0 %v510_v12 }
  0x1b   :  { %228 = vmatpush1.bf16.msra.mxu0 %v512_v15 }
  0x1c   :  { %229 = vmatprep.subr.bf16.mxu0 %v513_v16 }
  0x1f   :  { %230 = vmatpush1.bf16.msra.mxu0 %v515_v17 }
  0x20   :  { %231 = vmatprep.subr.bf16.mxu0 %v516_v18 }
  0x23   :  { %232 = vmatpush1.bf16.msra.mxu0 %v518_v19 }
  0x24   :  { %233 = vmatprep.subr.bf16.mxu0 %v519_v20 }
  0x27   :  { %234 = vmatpush1.bf16.msra.mxu0 %v521_v21 }
  0x28   :  { %235 = vmatprep.subr.bf16.mxu0 %v522_v22 }
  0x2b   :  { %236 = vmatpush1.bf16.msra.mxu0 %v524_v23 }
  0x2c   :  { %237 = vmatprep.subr.bf16.mxu0 %v525_v24 }
  0x2f   :  { %238 = vmatpush1.bf16.msra.mxu0 %v527_v25 }
  0x30   :  { %239 = vmatprep.subr.bf16.mxu0 %v528_v26 }
  0x33   :  { %240 = vmatpush1.bf16.msra.mxu0 %v530_v27 }
  0x34   :  { %241 = vmatprep.subr.bf16.mxu0 %v531_v28 }
  0x37   :  { %242 = vmatpush1.bf16.msra.mxu0 %v533_v29 }
  0x38   :  { %243 = vmatprep.subr.bf16.mxu0 %v534_v30 }
  0x3b   :  { %244 = vmatpush1.bf16.msra.mxu0 %v536_v31 }
  0x3c   :  { %245 = vmatprep.subr.bf16.mxu0 %v537_v32 }
  0x3f   :  { %246 = vmatpush1.bf16.msra.mxu0 %v539_v33 }
  0x42   :  { %248 = vmatmul.mubr.bf16.vlgmr.msra.gmra.mrb[0].mxu0 %v21_v35 }
  0xa1   :  { %v264_v54 = vpop.xlane.xlu0 %263 }
  0xa2   :  { %479 = vmatpush3.msra.mxu1 %v264_v54 }
  0xa3   :  { %481 = vmatmul.mubr.msk.f32.vlgmr.msra.gmra.mrb[0].mxu1 %vm271_vm1, %v270_v53  ;;  %483 = vmatprep.subr.mxu1 %v542_v43 }
  0xa4   :  { %485 = vmatprep.mubr.msk.f32.mxu1 %vm543_vm0, %v542_v43 }
 0x115   :  { %v249_v44 = vpop.f32.mrb[0].mxu0 }
 0x116   :  { %v258_v45 = vsub.f32 %v17_v36, %v249_v44  ;;  %v251_v46 = vpop.f32.mrb[1].mxu0 }
 0x117   :  { %v259_v47 = vsub.f32 %v18_v37, %v251_v46  ;;  %v253_v48 = vpop.f32.mrb[2].mxu0 }
 0x118   :  { %v265_v49 = vmul.f32 %v258_v45, %v258_v45  ;;  %v254_v50 = vpop.f32.mrb[3].mxu0 }
 0x119   :  { %v266_v51 = vmul.f32 %v259_v47, %v259_v47 }
 0x11b   :  { %v267_v52 = vadd.f32 %v266_v51, %v265_v49 }
 0x11d   :  { %268 = vadd.xlane.f32.xlu0 %v267_v52 }
 0x176   :  { %v341_v56 = vpop.f32.mrb[0].mxu1 }
 0x177   :  { %v482_v57 = vpop.f32.mrb[1].mxu1  ;;  %v415_v63 = vmul.f32 0.0009765625, %v341_v56 }
 0x1aa   :  { %v269_v55 = vpop.xlane.xlu0 %268 }
 0x1ab   :  { %484 = vmatpush3.msra.mxu1 %v269_v55 }
 0x1ac   :  { %486 = vmatmul.mubr.msk.f32.vlgmr.msra.gmra.mrb[2].mxu1 %vm271_vm1, %v270_v53 }
 0x27f   :  { %v411_v58 = vpop.f32.mrb[2].mxu1 }
 0x280   :  { %v416_v59 = vmul.f32 0.0009765625, %v411_v58  ;;  %v487_v60 = vpop.f32.mrb[3].mxu1 }
 0x282   :  { %v417_v61 = vsub.f32 0.0, %v416_v59 }
 0x284   :  { %v418_v62 = vmul.f32 1.442695, %v417_v61 }
 0x286   :  { %540 = vpow2.f32 %v418_v62 }
 0x290   :  { %v541_v0 = vpop.eup %540 }
 0x291   :  { %v420_v1 = vmul.f32 %v541_v0, %v415_v63 }
 0x293   :  { %v423_v2 = vsel %vm422_vm2, %v420_v1, 0.0 }
 0x294   :  { %424 = vadd.xlane.f32.xlu1 %v423_v2 }
 0x321   :  { %v425_v3 = vpop.xlane.xlu1 %424 }
 0x322   :  { %v426_v4 = vrot.slane %v425_v3, 4 }
 0x324   :  { %v427_v5 = vadd.f32 %v426_v4, %v425_v3 }
 0x326   :  { %v428_v6 = vrot.slane %v427_v5, 2 }
 0x328   :  { %v429_v7 = vadd.f32 %v428_v6, %v427_v5 }
 0x32a   :  { %v430_v8 = vrot.slane %v429_v7, 1 }
 0x32c   :  { %v431_v9 = vadd.f32 %v430_v8, %v429_v7 }
 0x32e   :  { %488 = vpush %v431_v9 }
 0x35f   :  { %s489_s9 = spop %488 }
 0x360   :  { %v433_v10 = vstv %s489_s9 }
 0x361   :  { %435 = vst.msk [vmem:[%s692_s4] sm:$0x1] %vm434_vm3, %v433_v10 }

</bundles_post_ra>
